<compile_context>
chip_gen: v7x
topology: tpu7x:2x2x1
jax: 0.10.0
libtpu: 0.0.40
codegen_flags: <defaults>
</compile_context>

<pallas_src>
import math

import jax
import jax.numpy as jnp
from jax.experimental import pallas as pl
from jax.experimental.pallas import tpu as pltpu


def _mlp_kernel(x1_ref, x2_ref, w1a_ref, w1b_ref, b1_ref, w2_ref, b2_ref, o_ref):
    # linear_0 on the concatenated input, expressed as a split matmul so no
    # concat / extra HBM pass is needed:  h = x1 @ W1a + x2 @ W1b + b1
    # (With packing, the refs hold the block-diagonal / tiled weights; the math
    # is identical per batch row.)
    h = jnp.dot(x1_ref[...], w1a_ref[...], preferred_element_type=jnp.float32)
    h = h + jnp.dot(x2_ref[...], w1b_ref[...], preferred_element_type=jnp.float32)
    h = h + b1_ref[...]
    h = jnp.maximum(h, 0.0)                               # relu_0
    y = jnp.dot(h.astype(w2_ref.dtype), w2_ref[...],      # linear_1
                preferred_element_type=jnp.float32)
    y = y + b2_ref[...]
    o_ref[...] = y.astype(o_ref.dtype)


def choose_pack(batch, d1, d2, hidden, d_out, itemsize=4, max_weight_bytes=8 << 20):
    """Rows-per-packed-row P: smallest P with (P * d_out) % 128 == 0, if usable."""
    p = 128 // math.gcd(128, d_out)
    if p <= 1 or batch % p != 0:
        return 1
    packed_w_bytes = p * p * (d1 * hidden + d2 * hidden + hidden * d_out) * itemsize
    if packed_w_bytes > max_weight_bytes:
        # TODO(synk): for large feature dims the natural layout is already
        # lane-dense; skip packing instead of blowing up block-diagonal weights.
        return 1
    return p


def pack_params(params, pack):
    """Expand weights into block-diagonal kron(I_P, W) form (once, off the hot path)."""
    if pack == 1:
        out = dict(params)
        out["pack"] = 1
        return out
    eye = jnp.eye(pack, dtype=params["w1a"].dtype)
    return {
        "w1a": jnp.kron(eye, params["w1a"]),     # (P*D1, P*H)
        "w1b": jnp.kron(eye, params["w1b"]),     # (P*D2, P*H)
        "b1": jnp.tile(params["b1"], (1, pack)),  # (1, P*H)
        "w2": jnp.kron(eye, params["w2"]),        # (P*H, P*D_out)
        "b2": jnp.tile(params["b2"], (1, pack)),  # (1, P*D_out)
        "pack": pack,
    }


def _pick_tm(batch, pack, row_bytes, tm, tile_budget_bytes=5 << 20):
    """Batch-tile size in (original) batch rows.

    Constraints: multiple of 8*pack (sublane alignment of the packed block) unless
    it covers the whole batch; capped so double-buffered activation tiles fit VMEM
    comfortably; never a single grid step when the batch can be split (so both
    v7x TensorCores get work).
    """
    unit = 8 * pack
    if batch <= unit:
        return batch                         # single full-batch block (always legal)
    tm = min(tm, batch)
    cap = max(unit, tile_budget_bytes // max(row_bytes, 1))   # ~<=5 MiB/tile, x2 buffered
    tm = min(tm, cap)
    half = -(-batch // 2)                    # ceil(batch / 2)
    half = -(-half // unit) * unit           # rounded up to a legal tile
    tm = min(tm, half)                       # >= 2 grid steps whenever splittable
    return max(unit, (tm // unit) * unit)


def pairs_fuse_forward(x1, x2, packed_params, tm=16384):
    """Forward pass of PairsFuseModel (Config.PRE, eval mode) via Pallas."""
    p = packed_params
    P = int(p["pack"])
    w1a, w1b, b1, w2, b2 = p["w1a"], p["w1b"], p["b1"], p["w2"], p["b2"]

    B, D1 = x1.shape
    B2, D2 = x2.shape
    assert B == B2 and B % P == 0
    PD1, PH = w1a.shape
    PD2 = w1b.shape[0]
    PDo = w2.shape[1]
    assert PD1 == P * D1 and PD2 == P * D2

    # Free (layout-preserving, row-major) reshapes: fold P consecutive batch rows
    # into one packed, lane-dense row.
    Bp = B // P
    x1p = x1.reshape(Bp, PD1)
    x2p = x2.reshape(Bp, PD2)

    itemsize = jnp.dtype(x1.dtype).itemsize
    row_bytes = (D1 + D2 + PDo // P) * itemsize          # HBM bytes per batch row
    TM = _pick_tm(B, P, row_bytes, tm)
    TMp = TM // P
    grid = (pl.cdiv(Bp, TMp),)

    cost = pl.CostEstimate(
        # executed MXU flops (includes the block-diagonal zero padding)
        flops=int(2 * Bp * (PD1 * PH + PD2 * PH + PH * PDo)),
        transcendentals=0,
        bytes_accessed=int(x1.nbytes + x2.nbytes + w1a.nbytes + w1b.nbytes
                           + b1.nbytes + w2.nbytes + b2.nbytes
                           + Bp * PDo * itemsize),
    )

    out = pl.pallas_call(
        _mlp_kernel,
        out_shape=jax.ShapeDtypeStruct((Bp, PDo), x1.dtype),
        grid=grid,
        in_specs=[
            pl.BlockSpec((TMp, PD1), lambda i: (i, 0)),   # x1 tile (pipelined)
            pl.BlockSpec((TMp, PD2), lambda i: (i, 0)),   # x2 tile (pipelined)
            pl.BlockSpec((PD1, PH), lambda i: (0, 0)),    # W1a (block-diag): VMEM-resident
            pl.BlockSpec((PD2, PH), lambda i: (0, 0)),    # W1b (block-diag): VMEM-resident
            pl.BlockSpec((1, PH), lambda i: (0, 0)),      # b1 (tiled)
            pl.BlockSpec((PH, PDo), lambda i: (0, 0)),    # W2 (block-diag): VMEM-resident
            pl.BlockSpec((1, PDo), lambda i: (0, 0)),     # b2 (tiled)
        ],
        # Lane-dense store: PDo is a multiple of 128 whenever P > 1.
        out_specs=pl.BlockSpec((TMp, PDo), lambda i: (i, 0)),
        compiler_params=pltpu.CompilerParams(
            dimension_semantics=("parallel",),            # shard grid steps over v7x's 2 TCs
            vmem_limit_bytes=32 * 1024 * 1024,            # v5e scoped default is only 16 MiB
        ),
        cost_estimate=cost,
    )(x1p, x2p, w1a, w1b, b1, w2, b2)

    # Free reshape back to the module's (B, D_out) output.
    return out.reshape(B, PDo // P)


def init_params(key, input_dim_1, input_dim_2, output_dim,
                hidden_dim=-1, n_layers=2, dtype=jnp.float32):
    """Deterministic parameter init matching PairsFuseModel(Config.PRE) shapes.

    n_layers=2 -> dims = [D1+D2, hidden, output] (two Linear layers).  Weights are
    stored as (in, out) == torch Linear weight transposed; W1 is split once into
    the x1 / x2 row-blocks so the kernel never needs a concat.
    """
    assert n_layers == 2, "this script implements the default n_layers=2 MLP"
    input_dim = input_dim_1 + input_dim_2
    if hidden_dim == -1:
        hidden_dim = input_dim
    k1, k2, k3, k4 = jax.random.split(key, 4)
    s1 = 1.0 / (input_dim ** 0.5)     # torch.nn.Linear default: U(-1/sqrt(in), 1/sqrt(in))
    s2 = 1.0 / (hidden_dim ** 0.5)
    w1 = jax.random.uniform(k1, (input_dim, hidden_dim), dtype, -s1, s1)
    return {
        "w1a": w1[:input_dim_1],                 # rows multiplying x1
        "w1b": w1[input_dim_1:],                 # rows multiplying x2
        "b1": jax.random.uniform(k2, (1, hidden_dim), dtype, -s1, s1),
        "w2": jax.random.uniform(k3, (hidden_dim, output_dim), dtype, -s2, s2),
        "b2": jax.random.uniform(k4, (1, output_dim), dtype, -s2, s2),
    }


def reference_forward(x1, x2, params):
    # Mirrors the torch module exactly: concat then dense layers.
    w1 = jnp.concatenate([params["w1a"], params["w1b"]], axis=0)
    x = jnp.concatenate([x1, x2], axis=1)
    h = jnp.maximum(x @ w1 + params["b1"], 0.0)
    return h @ params["w2"] + params["b2"]


if __name__ == "__main__":
    key = jax.random.PRNGKey(0)
    kx1, kx2, kp, kt = jax.random.split(key, 4)

    batch, input_dim_1, input_dim_2, output_dim = 1024, 16, 16, 8

    x1 = jax.random.normal(kx1, (batch, input_dim_1), jnp.float32)
    x2 = jax.random.normal(kx2, (batch, input_dim_2), jnp.float32)
    params = init_params(kp, input_dim_1, input_dim_2, output_dim)
    hidden = params["w1a"].shape[1]
    ref = reference_forward(x1, x2, params)

    # Main path: packed lane-dense layout (P=16 here), default TM -> >=2 grid steps.
    pack = choose_pack(batch, input_dim_1, input_dim_2, hidden, output_dim)
    packed = pack_params(params, pack)
    fwd = jax.jit(lambda a, b: pairs_fuse_forward(a, b, packed))
    out = jax.block_until_ready(fwd(x1, x2))
    assert out.shape == (batch, output_dim)
    assert jnp.allclose(out, ref, atol=1e-4, rtol=1e-4)

    # Packed path with a non-divisible (masked) tail tile.
    out_tail = jax.block_until_ready(pairs_fuse_forward(x1, x2, packed, tm=384))
    assert jnp.allclose(out_tail, ref, atol=1e-4, rtol=1e-4)

    # Fallback path: batch not divisible by the packing factor -> pack == 1.
    b_odd = 200
    y1 = jax.random.normal(kt, (b_odd, input_dim_1), jnp.float32)
    y2 = jax.random.normal(jax.random.fold_in(kt, 1), (b_odd, input_dim_2), jnp.float32)
    pack1 = choose_pack(b_odd, input_dim_1, input_dim_2, hidden, output_dim)
    assert pack1 == 1
    packed1 = pack_params(params, pack1)
    out1 = jax.block_until_ready(pairs_fuse_forward(y1, y2, packed1, tm=64))
    ref1 = reference_forward(y1, y2, params)
    assert out1.shape == (b_odd, output_dim)
    assert jnp.allclose(out1, ref1, atol=1e-4, rtol=1e-4)

    print("KERNEL_OK")
</pallas_src>

<mosaic_0001>
module attributes {stable_mosaic.version = 11 : i64} {
  func.func @_mlp_kernel(%arg0: i32, %arg1: memref<32x256xf32, #tpu.memory_space<vmem>>, %arg2: memref<32x256xf32, #tpu.memory_space<vmem>>, %arg3: memref<256x512xf32, #tpu.memory_space<vmem>>, %arg4: memref<256x512xf32, #tpu.memory_space<vmem>>, %arg5: memref<1x512xf32, #tpu.memory_space<vmem>>, %arg6: memref<512x128xf32, #tpu.memory_space<vmem>>, %arg7: memref<1x128xf32, #tpu.memory_space<vmem>>, %arg8: memref<32x128xf32, #tpu.memory_space<vmem>>) attributes {dimension_semantics = [#tpu.dimension_semantics<parallel>], iteration_bounds = array<i64: 2>, scalar_prefetch = 0 : i64, scratch_operands = 0 : i64, tpu.core_type = #tpu.core_type<tc>, window_params = [{transform_indices = @transform_0, window_bounds = array<i64: 32, 256>}, {transform_indices = @transform_1, window_bounds = array<i64: 32, 256>}, {pipeline_mode = #tpu.pipeline_mode<synchronous>, transform_indices = @transform_2, window_bounds = array<i64: 256, 512>}, {pipeline_mode = #tpu.pipeline_mode<synchronous>, transform_indices = @transform_3, window_bounds = array<i64: 256, 512>}, {pipeline_mode = #tpu.pipeline_mode<synchronous>, transform_indices = @transform_4, window_bounds = array<i64: 1, 512>}, {pipeline_mode = #tpu.pipeline_mode<synchronous>, transform_indices = @transform_5, window_bounds = array<i64: 512, 128>}, {pipeline_mode = #tpu.pipeline_mode<synchronous>, transform_indices = @transform_6, window_bounds = array<i64: 1, 128>}, {transform_indices = @transform_7, window_bounds = array<i64: 32, 128>}]} {
    %c0 = arith.constant 0 : index
    %c0_0 = arith.constant 0 : index
    %0 = vector.load %arg1[%c0, %c0_0] : memref<32x256xf32, #tpu.memory_space<vmem>>, vector<32x256xf32>
    %c0_1 = arith.constant 0 : index
    %c0_2 = arith.constant 0 : index
    %1 = vector.load %arg3[%c0_1, %c0_2] : memref<256x512xf32, #tpu.memory_space<vmem>>, vector<256x512xf32>
    %cst = arith.constant dense<0.000000e+00> : vector<32x512xf32>
    %2 = tpu.matmul %0, %1, %cst {dimension_numbers = #tpu.dot_dimension_numbers<[1], [0], [0], [1], [0, 0, 1, 1], [], []>} : vector<32x256xf32>, vector<256x512xf32>, vector<32x512xf32> -> vector<32x512xf32>
    %c0_3 = arith.constant 0 : index
    %c0_4 = arith.constant 0 : index
    %3 = vector.load %arg2[%c0_3, %c0_4] : memref<32x256xf32, #tpu.memory_space<vmem>>, vector<32x256xf32>
    %c0_5 = arith.constant 0 : index
    %c0_6 = arith.constant 0 : index
    %4 = vector.load %arg4[%c0_5, %c0_6] : memref<256x512xf32, #tpu.memory_space<vmem>>, vector<256x512xf32>
    %cst_7 = arith.constant dense<0.000000e+00> : vector<32x512xf32>
    %5 = tpu.matmul %3, %4, %cst_7 {dimension_numbers = #tpu.dot_dimension_numbers<[1], [0], [0], [1], [0, 0, 1, 1], [], []>} : vector<32x256xf32>, vector<256x512xf32>, vector<32x512xf32> -> vector<32x512xf32>
    %6 = arith.addf %2, %5 : vector<32x512xf32>
    %c0_8 = arith.constant 0 : index
    %c0_9 = arith.constant 0 : index
    %7 = vector.load %arg5[%c0_8, %c0_9] : memref<1x512xf32, #tpu.memory_space<vmem>>, vector<1x512xf32>
    %8 = vector.broadcast %7 : vector<1x512xf32> to vector<32x512xf32>
    %9 = arith.addf %6, %8 : vector<32x512xf32>
    %cst_10 = arith.constant 0.000000e+00 : f32
    %10 = vector.broadcast %cst_10 : f32 to vector<32x512xf32>
    %11 = arith.maximumf %9, %10 : vector<32x512xf32>
    %c0_11 = arith.constant 0 : index
    %c0_12 = arith.constant 0 : index
    %12 = vector.load %arg6[%c0_11, %c0_12] : memref<512x128xf32, #tpu.memory_space<vmem>>, vector<512x128xf32>
    %cst_13 = arith.constant dense<0.000000e+00> : vector<32x128xf32>
    %13 = tpu.matmul %11, %12, %cst_13 {dimension_numbers = #tpu.dot_dimension_numbers<[1], [0], [0], [1], [0, 0, 1, 1], [], []>} : vector<32x512xf32>, vector<512x128xf32>, vector<32x128xf32> -> vector<32x128xf32>
    %c0_14 = arith.constant 0 : index
    %c0_15 = arith.constant 0 : index
    %14 = vector.load %arg7[%c0_14, %c0_15] : memref<1x128xf32, #tpu.memory_space<vmem>>, vector<1x128xf32>
    %15 = vector.broadcast %14 : vector<1x128xf32> to vector<32x128xf32>
    %16 = arith.addf %13, %15 : vector<32x128xf32>
    %c0_16 = arith.constant 0 : index
    %c0_17 = arith.constant 0 : index
    %17 = vector.load %arg8[%c0_16, %c0_17] : memref<32x128xf32, #tpu.memory_space<vmem>>, vector<32x128xf32>
    tpu.vector_store %arg8[%c0_16, %c0_17], %16 {strides = array<i32>} : memref<32x128xf32, #tpu.memory_space<vmem>>, vector<32x128xf32>,
    return
  }
  func.func @transform_0(%arg0: i32) -> (i32, i32) {
    %c0_i32 = arith.constant 0 : i32
    %c0_i32_0 = arith.constant 0 : i32
    return %arg0, %c0_i32 : i32, i32
  }
  func.func @transform_1(%arg0: i32) -> (i32, i32) {
    %c0_i32 = arith.constant 0 : i32
    %c0_i32_0 = arith.constant 0 : i32
    return %arg0, %c0_i32 : i32, i32
  }
  func.func @transform_2(%arg0: i32) -> (i32, i32) {
    %c0_i32 = arith.constant 0 : i32
    %c0_i32_0 = arith.constant 0 : i32
    %c0_i32_1 = arith.constant 0 : i32
    return %c0_i32, %c0_i32_0 : i32, i32
  }
  func.func @transform_3(%arg0: i32) -> (i32, i32) {
    %c0_i32 = arith.constant 0 : i32
    %c0_i32_0 = arith.constant 0 : i32
    %c0_i32_1 = arith.constant 0 : i32
    return %c0_i32, %c0_i32_0 : i32, i32
  }
  func.func @transform_4(%arg0: i32) -> (i32, i32) {
    %c0_i32 = arith.constant 0 : i32
    %c0_i32_0 = arith.constant 0 : i32
    %c0_i32_1 = arith.constant 0 : i32
    return %c0_i32, %c0_i32_0 : i32, i32
  }
  func.func @transform_5(%arg0: i32) -> (i32, i32) {
    %c0_i32 = arith.constant 0 : i32
    %c0_i32_0 = arith.constant 0 : i32
    %c0_i32_1 = arith.constant 0 : i32
    return %c0_i32, %c0_i32_0 : i32, i32
  }
  func.func @transform_6(%arg0: i32) -> (i32, i32) {
    %c0_i32 = arith.constant 0 : i32
    %c0_i32_0 = arith.constant 0 : i32
    %c0_i32_1 = arith.constant 0 : i32
    return %c0_i32, %c0_i32_0 : i32, i32
  }
  func.func @transform_7(%arg0: i32) -> (i32, i32) {
    %c0_i32 = arith.constant 0 : i32
    %c0_i32_0 = arith.constant 0 : i32
    return %arg0, %c0_i32 : i32, i32
  }
}

</mosaic_0001>

<bundles_post_ra>
// kernel: _lambda_.1
= control target key start
LH: loop header
LB: loop body
LE: loop exit
PB: predicated region body
PF: predicated region fallthrough
CT: control target
= control target key end

     0   :  { %s1803_s24 = smov 0   ;;  %s2820_s0 = inlined_call_operand.vmem [shape: f32[64,256], index: 0, kind: input, shape index: {}]   ;;  %s2821_s1 = inlined_call_operand.vmem [shape: f32[64,256], index: 1, kind: input, shape index: {}]   ;;  %s2822_s2 = inlined_call_operand.vmem [shape: f32[256,512], index: 2, kind: input, shape index: {}]   ;;  %s2823_s3 = inlined_call_operand.vmem [shape: f32[256,512], index: 3, kind: input, shape index: {}]   ;;  %s2824_s4 = inlined_call_operand.vmem [shape: f32[1,512], index: 4, kind: input, shape index: {}]   ;;  %s2825_s5 = inlined_call_operand.vmem [shape: f32[512,128], index: 5, kind: input, shape index: {}]   ;;  %s2826_s6 = inlined_call_operand.vmem [shape: f32[1,128], index: 6, kind: input, shape index: {}]   ;;  %s2827_s7 = inlined_call_operand.vmem [shape: f32[64,128], index: 7, kind: output, shape index: {}]  }
   0x1 LB: > { %s1305_s25 = sadd.s32 4294967295, %s1761_s24   ;;  %p1309_p0 = scmp.ge.s32.totalorder %s1761_s24, 1  ;;  %s1761_s24 = sphi %s1803_s24, %s17_s24  }
   0x2   : > { %p251_p1 = scmp.lt.s32.totalorder %s1761_s24, 3 }
   0x4   : > { %p252_p2 = pnand %p1309_p0, %p251_p1 }
   0x5   : > { %v455_v0 = vld [vmem:[%s2823_s3 + $0x8] sm:$0xff] (!%p252_p2)  ;;  %v457_v2 = vld [vmem:[%s2823_s3 + $0x18] sm:$0xff] (!%p252_p2)  ;;  %v454_v5 = vld [vmem:[%s2823_s3] sm:$0xff] (!%p252_p2)  ;;  %s1310_s26 = sshll.u32 (!%p252_p2), %s1305_s25, 2 }
   0x6   : > { %255 = sbr.rel (%p252_p2) target bundleno = 587 (0x24b), region = 48  ;;  %v459_v1 = vld [vmem:[%s2823_s3 + $0x28] sm:$0xff] (!%p252_p2)  ;;  %v461_v4 = vld [vmem:[%s2823_s3 + $0x38] sm:$0xff] (!%p252_p2)  ;;  %v458_v6 = vld [vmem:[%s2823_s3 + $0x20] sm:$0xff] (!%p252_p2)  ;;  %p291_p3 = scmp.lt.s32.totalorder (!%p252_p2), %s1310_s26, 7 }
   0x7   : > { %v1411_v3 = vpack.c.bf16 (!%p252_p2), %v459_v1, %v455_v0  ;;  %v1475_v7 = vpack.c.bf16 (!%p252_p2), %v461_v4, %v457_v2  ;;  %v1413_v8 = vpack.c.bf16 (!%p252_p2), %v458_v6, %v454_v5  ;;  %v456_v9 = vld [vmem:[%s2823_s3 + $0x10] sm:$0xff] (!%p252_p2)  ;;  %v463_v11 = vld [vmem:[%s2823_s3 + $0x48] sm:$0xff] (!%p252_p2)  ;;  %v465_v14 = vld [vmem:[%s2823_s3 + $0x58] sm:$0xff] (!%p252_p2) }
   0x8   : > { %v460_v10 = vld [vmem:[%s2823_s3 + $0x30] sm:$0xff] (!%p252_p2)  ;;  %v467_v13 = vld [vmem:[%s2823_s3 + $0x68] sm:$0xff] (!%p252_p2)  ;;  %v469_v15 = vld [vmem:[%s2823_s3 + $0x78] sm:$0xff] (!%p252_p2) }
   0x9   : > { %1412 = vmatprep.subr.bf16.mxu0 (!%p252_p2), %v1411_v3  ;;  %v1477_v12 = vpack.c.bf16 (!%p252_p2), %v460_v10, %v456_v9  ;;  %1476 = vmatprep.subr.bf16.mxu1 (!%p252_p2), %v1475_v7  ;;  %v1415_v16 = vpack.c.bf16 (!%p252_p2), %v467_v13, %v463_v11  ;;  %v1479_v17 = vpack.c.bf16 (!%p252_p2), %v469_v15, %v465_v14  ;;  %v462_v18 = vld [vmem:[%s2823_s3 + $0x40] sm:$0xff] (!%p252_p2)  ;;  %v464_v20 = vld [vmem:[%s2823_s3 + $0x50] sm:$0xff] (!%p252_p2)  ;;  %v471_v23 = vld [vmem:[%s2823_s3 + $0x88] sm:$0xff] (!%p252_p2) }
   0xa   : > { %1414 = vmatpush1.bf16.msra.mxu0 (!%p252_p2), %v1413_v8  ;;  %v466_v19 = vld [vmem:[%s2823_s3 + $0x60] sm:$0xff] (!%p252_p2)  ;;  %v468_v22 = vld [vmem:[%s2823_s3 + $0x70] sm:$0xff] (!%p252_p2)  ;;  %v475_v24 = vld [vmem:[%s2823_s3 + $0xa8] sm:$0xff] (!%p252_p2) }
   0xb   : > { %1478 = vmatpush1.bf16.msra.mxu1 (!%p252_p2), %v1477_v12  ;;  %v1417_v21 = vpack.c.bf16 (!%p252_p2), %v466_v19, %v462_v18  ;;  %1416 = vmatprep.subr.bf16.mxu0 (!%p252_p2), %v1415_v16  ;;  %v1481_v25 = vpack.c.bf16 (!%p252_p2), %v468_v22, %v464_v20  ;;  %v1419_v26 = vpack.c.bf16 (!%p252_p2), %v475_v24, %v471_v23  ;;  %v473_v27 = vld [vmem:[%s2823_s3 + $0x98] sm:$0xff] (!%p252_p2)  ;;  %v470_v29 = vld [vmem:[%s2823_s3 + $0x80] sm:$0xff] (!%p252_p2)  ;;  %v472_v32 = vld [vmem:[%s2823_s3 + $0x90] sm:$0xff] (!%p252_p2) }
   0xc   : > { %1480 = vmatprep.subr.bf16.mxu1 (!%p252_p2), %v1479_v17  ;;  %v477_v28 = vld [vmem:[%s2823_s3 + $0xb8] sm:$0xff] (!%p252_p2)  ;;  %v474_v31 = vld [vmem:[%s2823_s3 + $0xa0] sm:$0xff] (!%p252_p2)  ;;  %v476_v33 = vld [vmem:[%s2823_s3 + $0xb0] sm:$0xff] (!%p252_p2) }
   0xd   : > { %v1483_v30 = vpack.c.bf16 %v477_v28, %v473_v27  ;;  %v1421_v34 = vpack.c.bf16 %v474_v31, %v470_v29  ;;  %v479_v35 = vld [vmem:[%s2823_s3 + $0xc8] sm:$0xff]  ;;  %v481_v37 = vld [vmem:[%s2823_s3 + $0xd8] sm:$0xff]  ;;  %v1485_v38 = vpack.c.bf16 %v476_v33, %v472_v32  ;;  %v478_v41 = vld [vmem:[%s2823_s3 + $0xc0] sm:$0xff]  ;;  %s2829_s26 = smov (!%p291_p3, %s1310_s26), 7 }
   0xe   : > { %1418 = vmatpush1.bf16.msra.mxu0 %v1417_v21  ;;  %v483_v36 = vld [vmem:[%s2823_s3 + $0xe8] sm:$0xff]  ;;  %v485_v40 = vld [vmem:[%s2823_s3 + $0xf8] sm:$0xff]  ;;  %v482_v42 = vld [vmem:[%s2823_s3 + $0xe0] sm:$0xff]  ;;  %s1321_s27 = sshll.u32 %s2829_s26, 4  ;;  %s1317_s12 = sshll.u32 %s2829_s26, 3 }
   0xf   : > { %1482 = vmatpush1.bf16.msra.mxu1 %v1481_v25  ;;  %1420 = vmatprep.subr.bf16.mxu0 %v1419_v26  ;;  %v1423_v39 = vpack.c.bf16 %v483_v36, %v479_v35  ;;  %v1487_v43 = vpack.c.bf16 %v485_v40, %v481_v37  ;;  %v480_v44 = vld [vmem:[%s2823_s3 + $0xd0] sm:$0xff]  ;;  %v487_v46 = vld [vmem:[%s2823_s3 + $0x108] sm:$0xff]  ;;  %v489_v48 = vld [vmem:[%s2823_s3 + $0x118] sm:$0xff]  ;;  %v1425_v50 = vpack.c.bf16 %v482_v42, %v478_v41  ;;  %s2098_s22 = scalar_lea.vmem %s2821_s1, %s1321_s27  ;;  %s2386_s16 = scalar_lea.vmem %s2820_s0, %s1321_s27 }
  0x10   : > { %1484 = vmatprep.subr.bf16.mxu1 %v1483_v30  ;;  %v484_v45 = vld [vmem:[%s2823_s3 + $0xf0] sm:$0xff]  ;;  %v491_v47 = vld [vmem:[%s2823_s3 + $0x128] sm:$0xff]  ;;  %v493_v49 = vld [vmem:[%s2823_s3 + $0x138] sm:$0xff]  ;;  %s308_s14 = scalar_lea.vmem %s2827_s7, %s1317_s12 }
  0x11   : > { %v1489_v51 = vpack.c.bf16 %v484_v45, %v480_v44  ;;  %v1427_v52 = vpack.c.bf16 %v491_v47, %v487_v46  ;;  %v486_v53 = vld [vmem:[%s2823_s3 + $0x100] sm:$0xff]  ;;  %v488_v55 = vld [vmem:[%s2823_s3 + $0x110] sm:$0xff]  ;;  %v1491_v56 = vpack.c.bf16 %v493_v49, %v489_v48  ;;  %v495_v58 = vld [vmem:[%s2823_s3 + $0x148] sm:$0xff] }
  0x12   : > { %1422 = vmatpush1.bf16.msra.mxu0 %v1421_v34  ;;  %v490_v54 = vld [vmem:[%s2823_s3 + $0x120] sm:$0xff]  ;;  %v492_v57 = vld [vmem:[%s2823_s3 + $0x130] sm:$0xff]  ;;  %v499_v59 = vld [vmem:[%s2823_s3 + $0x168] sm:$0xff] }
  0x13   : > { %1486 = vmatpush1.bf16.msra.mxu1 %v1485_v38  ;;  %1424 = vmatprep.subr.bf16.mxu0 %v1423_v39  ;;  %v497_v60 = vld [vmem:[%s2823_s3 + $0x158] sm:$0xff]  ;;  %v1429_v62 = vpack.c.bf16 %v490_v54, %v486_v53  ;;  %v1493_v63 = vpack.c.bf16 %v492_v57, %v488_v55  ;;  %v1431_v0 = vpack.c.bf16 %v499_v59, %v495_v58  ;;  %v494_v1 = vld [vmem:[%s2823_s3 + $0x140] sm:$0xff]  ;;  %v496_v3 = vld [vmem:[%s2823_s3 + $0x150] sm:$0xff] }
  0x14   : > { %1488 = vmatprep.subr.bf16.mxu1 %v1487_v43  ;;  %v501_v61 = vld [vmem:[%s2823_s3 + $0x178] sm:$0xff]  ;;  %v498_v2 = vld [vmem:[%s2823_s3 + $0x160] sm:$0xff]  ;;  %v500_v5 = vld [vmem:[%s2823_s3 + $0x170] sm:$0xff] }
  0x15   : > { %v1495_v4 = vpack.c.bf16 %v501_v61, %v497_v60  ;;  %v503_v6 = vld [vmem:[%s2823_s3 + $0x188] sm:$0xff]  ;;  %v505_v8 = vld [vmem:[%s2823_s3 + $0x198] sm:$0xff]  ;;  %v1433_v10 = vpack.c.bf16 %v498_v2, %v494_v1  ;;  %v1497_v11 = vpack.c.bf16 %v500_v5, %v496_v3  ;;  %v502_v13 = vld [vmem:[%s2823_s3 + $0x180] sm:$0xff] }
  0x16   : > { %1426 = vmatpush1.bf16.msra.mxu0 %v1425_v50  ;;  %v507_v7 = vld [vmem:[%s2823_s3 + $0x1a8] sm:$0xff]  ;;  %v509_v9 = vld [vmem:[%s2823_s3 + $0x1b8] sm:$0xff]  ;;  %v506_v14 = vld [vmem:[%s2823_s3 + $0x1a0] sm:$0xff] }
  0x17   : > { %1490 = vmatpush1.bf16.msra.mxu1 %v1489_v51  ;;  %1428 = vmatprep.subr.bf16.mxu0 %v1427_v52  ;;  %v1435_v12 = vpack.c.bf16 %v507_v7, %v503_v6  ;;  %v504_v15 = vld [vmem:[%s2823_s3 + $0x190] sm:$0xff]  ;;  %v1499_v16 = vpack.c.bf16 %v509_v9, %v505_v8  ;;  %v511_v18 = vld [vmem:[%s2823_s3 + $0x1c8] sm:$0xff]  ;;  %v513_v20 = vld [vmem:[%s2823_s3 + $0x1d8] sm:$0xff]  ;;  %v1437_v22 = vpack.c.bf16 %v506_v14, %v502_v13 }
  0x18   : > { %1492 = vmatprep.subr.bf16.mxu1 %v1491_v56  ;;  %v508_v17 = vld [vmem:[%s2823_s3 + $0x1b0] sm:$0xff]  ;;  %v515_v19 = vld [vmem:[%s2823_s3 + $0x1e8] sm:$0xff]  ;;  %v517_v21 = vld [vmem:[%s2823_s3 + $0x1f8] sm:$0xff] }
  0x19   : > { %v1501_v23 = vpack.c.bf16 %v508_v17, %v504_v15  ;;  %v1439_v24 = vpack.c.bf16 %v515_v19, %v511_v18  ;;  %v510_v25 = vld [vmem:[%s2823_s3 + $0x1c0] sm:$0xff]  ;;  %v512_v27 = vld [vmem:[%s2823_s3 + $0x1d0] sm:$0xff]  ;;  %v1503_v28 = vpack.c.bf16 %v517_v21, %v513_v20  ;;  %v519_v30 = vld [vmem:[%s2823_s3 + $0x208] sm:$0xff] }
  0x1a   : > { %1430 = vmatpush1.bf16.msra.mxu0 %v1429_v62  ;;  %v514_v26 = vld [vmem:[%s2823_s3 + $0x1e0] sm:$0xff]  ;;  %v516_v29 = vld [vmem:[%s2823_s3 + $0x1f0] sm:$0xff]  ;;  %v523_v31 = vld [vmem:[%s2823_s3 + $0x228] sm:$0xff] }
  0x1b   : > { %1494 = vmatpush1.bf16.msra.mxu1 %v1493_v63  ;;  %1432 = vmatprep.subr.bf16.mxu0 %v1431_v0  ;;  %v521_v32 = vld [vmem:[%s2823_s3 + $0x218] sm:$0xff]  ;;  %v1441_v34 = vpack.c.bf16 %v514_v26, %v510_v25  ;;  %v1505_v35 = vpack.c.bf16 %v516_v29, %v512_v27  ;;  %v1443_v36 = vpack.c.bf16 %v523_v31, %v519_v30  ;;  %v518_v37 = vld [vmem:[%s2823_s3 + $0x200] sm:$0xff]  ;;  %v520_v39 = vld [vmem:[%s2823_s3 + $0x210] sm:$0xff] }
  0x1c   : > { %1496 = vmatprep.subr.bf16.mxu1 %v1495_v4  ;;  %v525_v33 = vld [vmem:[%s2823_s3 + $0x238] sm:$0xff]  ;;  %v522_v38 = vld [vmem:[%s2823_s3 + $0x220] sm:$0xff]  ;;  %v524_v41 = vld [vmem:[%s2823_s3 + $0x230] sm:$0xff] }
  0x1d   : > { %v1507_v40 = vpack.c.bf16 %v525_v33, %v521_v32  ;;  %v527_v42 = vld [vmem:[%s2823_s3 + $0x248] sm:$0xff]  ;;  %v529_v44 = vld [vmem:[%s2823_s3 + $0x258] sm:$0xff]  ;;  %v1445_v46 = vpack.c.bf16 %v522_v38, %v518_v37  ;;  %v1509_v47 = vpack.c.bf16 %v524_v41, %v520_v39  ;;  %v526_v49 = vld [vmem:[%s2823_s3 + $0x240] sm:$0xff] }
  0x1e   : > { %1434 = vmatpush1.bf16.msra.mxu0 %v1433_v10  ;;  %v531_v43 = vld [vmem:[%s2823_s3 + $0x268] sm:$0xff]  ;;  %v533_v45 = vld [vmem:[%s2823_s3 + $0x278] sm:$0xff]  ;;  %v530_v50 = vld [vmem:[%s2823_s3 + $0x260] sm:$0xff] }
  0x1f   : > { %1498 = vmatpush1.bf16.msra.mxu1 %v1497_v11  ;;  %1436 = vmatprep.subr.bf16.mxu0 %v1435_v12  ;;  %v1447_v48 = vpack.c.bf16 %v531_v43, %v527_v42  ;;  %v528_v51 = vld [vmem:[%s2823_s3 + $0x250] sm:$0xff]  ;;  %v1511_v52 = vpack.c.bf16 %v533_v45, %v529_v44  ;;  %v535_v54 = vld [vmem:[%s2823_s3 + $0x288] sm:$0xff]  ;;  %v537_v56 = vld [vmem:[%s2823_s3 + $0x298] sm:$0xff]  ;;  %v1449_v58 = vpack.c.bf16 %v530_v50, %v526_v49 }
  0x20   : > { %1500 = vmatprep.subr.bf16.mxu1 %v1499_v16  ;;  %v532_v53 = vld [vmem:[%s2823_s3 + $0x270] sm:$0xff]  ;;  %v539_v55 = vld [vmem:[%s2823_s3 + $0x2a8] sm:$0xff]  ;;  %v541_v57 = vld [vmem:[%s2823_s3 + $0x2b8] sm:$0xff] }
  0x21   : > { %v1513_v59 = vpack.c.bf16 %v532_v53, %v528_v51  ;;  %v1451_v60 = vpack.c.bf16 %v539_v55, %v535_v54  ;;  %v534_v61 = vld [vmem:[%s2823_s3 + $0x280] sm:$0xff]  ;;  %v536_v63 = vld [vmem:[%s2823_s3 + $0x290] sm:$0xff]  ;;  %v1515_v0 = vpack.c.bf16 %v541_v57, %v537_v56  ;;  %v543_v2 = vld [vmem:[%s2823_s3 + $0x2c8] sm:$0xff] }
  0x22   : > { %1438 = vmatpush1.bf16.msra.mxu0 %v1437_v22  ;;  %v538_v62 = vld [vmem:[%s2823_s3 + $0x2a0] sm:$0xff]  ;;  %v540_v1 = vld [vmem:[%s2823_s3 + $0x2b0] sm:$0xff]  ;;  %v547_v3 = vld [vmem:[%s2823_s3 + $0x2e8] sm:$0xff] }
  0x23   : > { %1502 = vmatpush1.bf16.msra.mxu1 %v1501_v23  ;;  %1440 = vmatprep.subr.bf16.mxu0 %v1439_v24  ;;  %v545_v4 = vld [vmem:[%s2823_s3 + $0x2d8] sm:$0xff]  ;;  %v1453_v6 = vpack.c.bf16 %v538_v62, %v534_v61  ;;  %v542_v7 = vld [vmem:[%s2823_s3 + $0x2c0] sm:$0xff]  ;;  %v1517_v8 = vpack.c.bf16 %v540_v1, %v536_v63  ;;  %v1455_v9 = vpack.c.bf16 %v547_v3, %v543_v2  ;;  %v544_v11 = vld [vmem:[%s2823_s3 + $0x2d0] sm:$0xff] }
  0x24   : > { %1504 = vmatprep.subr.bf16.mxu1 %v1503_v28  ;;  %v549_v5 = vld [vmem:[%s2823_s3 + $0x2f8] sm:$0xff]  ;;  %v546_v10 = vld [vmem:[%s2823_s3 + $0x2e0] sm:$0xff]  ;;  %v548_v12 = vld [vmem:[%s2823_s3 + $0x2f0] sm:$0xff] }
  0x25   : > { %v1519_v13 = vpack.c.bf16 %v549_v5, %v545_v4  ;;  %v551_v14 = vld [vmem:[%s2823_s3 + $0x308] sm:$0xff]  ;;  %v553_v17 = vld [vmem:[%s2823_s3 + $0x318] sm:$0xff]  ;;  %v1457_v19 = vpack.c.bf16 %v546_v10, %v542_v7  ;;  %v1521_v20 = vpack.c.bf16 %v548_v12, %v544_v11  ;;  %v550_v22 = vld [vmem:[%s2823_s3 + $0x300] sm:$0xff] }
  0x26   : > { %1442 = vmatpush1.bf16.msra.mxu0 %v1441_v34  ;;  %v555_v15 = vld [vmem:[%s2823_s3 + $0x328] sm:$0xff]  ;;  %v557_v18 = vld [vmem:[%s2823_s3 + $0x338] sm:$0xff]  ;;  %v554_v23 = vld [vmem:[%s2823_s3 + $0x320] sm:$0xff] }
  0x27   : > { %1506 = vmatpush1.bf16.msra.mxu1 %v1505_v35  ;;  %1444 = vmatprep.subr.bf16.mxu0 %v1443_v36  ;;  %v447_v16 = vld [vmem:[%s2098_s22 + $0x8] sm:$0xff]  ;;  %v1459_v21 = vpack.c.bf16 %v555_v15, %v551_v14  ;;  %v552_v24 = vld [vmem:[%s2823_s3 + $0x310] sm:$0xff]  ;;  %v1523_v25 = vpack.c.bf16 %v557_v18, %v553_v17  ;;  %v561_v29 = vld [vmem:[%s2823_s3 + $0x358] sm:$0xff]  ;;  %v1461_v31 = vpack.c.bf16 %v554_v23, %v550_v22 }
  0x28   : > { %1508 = vmatprep.subr.bf16.mxu1 %v1507_v40  ;;  %646 = vmatprep.mubr.f32.mxu0 %v447_v16  ;;  %v556_v26 = vld [vmem:[%s2823_s3 + $0x330] sm:$0xff]  ;;  %v559_v27 = vld [vmem:[%s2823_s3 + $0x348] sm:$0xff]  ;;  %v565_v30 = vld [vmem:[%s2823_s3 + $0x378] sm:$0xff] }
  0x29   : > { %735 = vmatprep.mubr.f32.mxu1 %v447_v16  ;;  %v563_v28 = vld [vmem:[%s2823_s3 + $0x368] sm:$0xff]  ;;  %v1525_v32 = vpack.c.bf16 %v556_v26, %v552_v24  ;;  %v558_v34 = vld [vmem:[%s2823_s3 + $0x340] sm:$0xff]  ;;  %v560_v36 = vld [vmem:[%s2823_s3 + $0x350] sm:$0xff]  ;;  %v1527_v37 = vpack.c.bf16 %v565_v30, %v561_v29 }
  0x2a   : > { %1446 = vmatpush1.bf16.msra.mxu0 %v1445_v46  ;;  %v1463_v33 = vpack.c.bf16 %v563_v28, %v559_v27  ;;  %v562_v35 = vld [vmem:[%s2823_s3 + $0x360] sm:$0xff]  ;;  %v564_v38 = vld [vmem:[%s2823_s3 + $0x370] sm:$0xff]  ;;  %v567_v39 = vld [vmem:[%s2823_s3 + $0x388] sm:$0xff] }
  0x2b   : > { %1510 = vmatpush1.bf16.msra.mxu1 %v1509_v47  ;;  %1448 = vmatprep.subr.bf16.mxu0 %v1447_v48  ;;  %v571_v40 = vld [vmem:[%s2823_s3 + $0x3a8] sm:$0xff]  ;;  %v569_v41 = vld [vmem:[%s2823_s3 + $0x398] sm:$0xff]  ;;  %v1465_v43 = vpack.c.bf16 %v562_v35, %v558_v34  ;;  %v1529_v44 = vpack.c.bf16 %v564_v38, %v560_v36  ;;  %v566_v46 = vld [vmem:[%s2823_s3 + $0x380] sm:$0xff] }
  0x2c   : > { %1512 = vmatprep.subr.bf16.mxu1 %v1511_v52  ;;  %v573_v42 = vld [vmem:[%s2823_s3 + $0x3b8] sm:$0xff]  ;;  %v1467_v45 = vpack.c.bf16 %v571_v40, %v567_v39  ;;  %v570_v47 = vld [vmem:[%s2823_s3 + $0x3a0] sm:$0xff]  ;;  %v568_v48 = vld [vmem:[%s2823_s3 + $0x390] sm:$0xff] }
  0x2d   : > { %v1531_v49 = vpack.c.bf16 %v573_v42, %v569_v41  ;;  %v572_v50 = vld [vmem:[%s2823_s3 + $0x3b0] sm:$0xff]  ;;  %v575_v51 = vld [vmem:[%s2823_s3 + $0x3c8] sm:$0xff]  ;;  %v577_v53 = vld [vmem:[%s2823_s3 + $0x3d8] sm:$0xff]  ;;  %v1469_v55 = vpack.c.bf16 %v570_v47, %v566_v46 }
  0x2e   : > { %1450 = vmatpush1.bf16.msra.mxu0 %v1449_v58  ;;  %v579_v52 = vld [vmem:[%s2823_s3 + $0x3e8] sm:$0xff]  ;;  %v581_v54 = vld [vmem:[%s2823_s3 + $0x3f8] sm:$0xff]  ;;  %v1533_v56 = vpack.c.bf16 %v572_v50, %v568_v48  ;;  %v574_v58 = vld [vmem:[%s2823_s3 + $0x3c0] sm:$0xff] }
  0x2f   : > { %1514 = vmatpush1.bf16.msra.mxu1 %v1513_v59  ;;  %1452 = vmatprep.subr.bf16.mxu0 %v1451_v60  ;;  %v1471_v57 = vpack.c.bf16 %v579_v52, %v575_v51  ;;  %v578_v59 = vld [vmem:[%s2823_s3 + $0x3e0] sm:$0xff]  ;;  %v576_v60 = vld [vmem:[%s2823_s3 + $0x3d0] sm:$0xff]  ;;  %v1535_v61 = vpack.c.bf16 %v581_v54, %v577_v53  ;;  %v319_v63 = vld [vmem:[%s2822_s2 + $0x8] sm:$0xff] }
  0x30   : > { %1516 = vmatprep.subr.bf16.mxu1 %v1515_v0  ;;  %v580_v62 = vld [vmem:[%s2823_s3 + $0x3f0] sm:$0xff]  ;;  %v323_v0 = vld [vmem:[%s2822_s2 + $0x28] sm:$0xff]  ;;  %v321_v1 = vld [vmem:[%s2822_s2 + $0x18] sm:$0xff]  ;;  %v1473_v3 = vpack.c.bf16 %v578_v59, %v574_v58 }
  0x31   : > { %v325_v2 = vld [vmem:[%s2822_s2 + $0x38] sm:$0xff]  ;;  %v1537_v4 = vpack.c.bf16 %v580_v62, %v576_v60  ;;  %v1539_v5 = vpack.c.bf16 %v323_v0, %v319_v63  ;;  %v322_v7 = vld [vmem:[%s2822_s2 + $0x20] sm:$0xff]  ;;  %v324_v10 = vld [vmem:[%s2822_s2 + $0x30] sm:$0xff] }
  0x32   : > { %1454 = vmatpush1.bf16.msra.mxu0 %v1453_v6  ;;  %v318_v6 = vld [vmem:[%s2822_s2] sm:$0xff]  ;;  %v327_v11 = vld [vmem:[%s2822_s2 + $0x48] sm:$0xff]  ;;  %v333_v14 = vld [vmem:[%s2822_s2 + $0x78] sm:$0xff] }
  0x33   : > { %1518 = vmatpush1.bf16.msra.mxu1 %v1517_v8  ;;  %1456 = vmatprep.subr.bf16.mxu0 %v1455_v9  ;;  %v320_v8 = vld [vmem:[%s2822_s2 + $0x10] sm:$0xff]  ;;  %v1603_v9 = vpack.c.bf16 %v325_v2, %v321_v1  ;;  %v331_v12 = vld [vmem:[%s2822_s2 + $0x68] sm:$0xff]  ;;  %v446_v15 = vld [vmem:[%s2098_s22] sm:$0xff]  ;;  %v1541_v16 = vpack.c.bf16 %v322_v7, %v318_v6 }
  0x34   : > { %1520 = vmatprep.subr.bf16.mxu1 %v1519_v13  ;;  %v329_v13 = vld [vmem:[%s2822_s2 + $0x58] sm:$0xff]  ;;  %v1605_v17 = vpack.c.bf16 %v324_v10, %v320_v8  ;;  %v1543_v18 = vpack.c.bf16 %v331_v12, %v327_v11  ;;  %v332_v23 = vld [vmem:[%s2822_s2 + $0x70] sm:$0xff]  ;;  %v335_v24 = vld [vmem:[%s2822_s2 + $0x88] sm:$0xff] }
  0x35   : > { %v1607_v22 = vpack.c.bf16 %v333_v14, %v329_v13  ;;  %v337_v26 = vld [vmem:[%s2822_s2 + $0x98] sm:$0xff]  ;;  %v340_v35 = vld [vmem:[%s2822_s2 + $0xb0] sm:$0xff]  ;;  %v343_v36 = vld [vmem:[%s2822_s2 + $0xc8] sm:$0xff] }
  0x36   : > { %1458 = vmatpush1.bf16.msra.mxu0 %v1457_v19  ;;  %v326_v19 = vld [vmem:[%s2822_s2 + $0x40] sm:$0xff]  ;;  %v341_v27 = vld [vmem:[%s2822_s2 + $0xb8] sm:$0xff]  ;;  %v348_v47 = vld [vmem:[%s2822_s2 + $0xf0] sm:$0xff] }
  0x37   : > { %1522 = vmatpush1.bf16.msra.mxu1 %v1521_v20  ;;  %1460 = vmatprep.subr.bf16.mxu0 %v1459_v21  ;;  %v330_v20 = vld [vmem:[%s2822_s2 + $0x60] sm:$0xff]  ;;  %v328_v21 = vld [vmem:[%s2822_s2 + $0x50] sm:$0xff]  ;;  %v1611_v34 = vpack.c.bf16 %v341_v27, %v337_v26  ;;  %v345_v38 = vld [vmem:[%s2822_s2 + $0xd8] sm:$0xff] }
  0x38   : > { %1524 = vmatprep.subr.bf16.mxu1 %v1523_v25  ;;  %v339_v25 = vld [vmem:[%s2822_s2 + $0xa8] sm:$0xff]  ;;  %v1545_v28 = vpack.c.bf16 %v330_v20, %v326_v19  ;;  %v1609_v29 = vpack.c.bf16 %v332_v23, %v328_v21  ;;  %v349_v39 = vld [vmem:[%s2822_s2 + $0xf8] sm:$0xff]  ;;  %v350_v53 = vld [vmem:[%s2822_s2 + $0x100] sm:$0xff] }
  0x39   : > { %v1547_v30 = vpack.c.bf16 %v339_v25, %v335_v24  ;;  %v1615_v46 = vpack.c.bf16 %v349_v39, %v345_v38  ;;  %v351_v48 = vld [vmem:[%s2822_s2 + $0x108] sm:$0xff]  ;;  %v353_v50 = vld [vmem:[%s2822_s2 + $0x118] sm:$0xff]  ;;  %v354_v54 = vld [vmem:[%s2822_s2 + $0x120] sm:$0xff] }
  0x3a   : > { %1462 = vmatpush1.bf16.msra.mxu0 %v1461_v31  ;;  %v334_v31 = vld [vmem:[%s2822_s2 + $0x80] sm:$0xff]  ;;  %v357_v51 = vld [vmem:[%s2822_s2 + $0x138] sm:$0xff]  ;;  %v356_v58 = vld [vmem:[%s2822_s2 + $0x130] sm:$0xff]  ;;  %v1557_v2 = vpack.c.bf16 %v354_v54, %v350_v53 }
  0x3b   : > { %1526 = vmatpush1.bf16.msra.mxu1 %v1525_v32  ;;  %1464 = vmatprep.subr.bf16.mxu0 %v1463_v33  ;;  %v338_v32 = vld [vmem:[%s2822_s2 + $0xa0] sm:$0xff]  ;;  %v336_v33 = vld [vmem:[%s2822_s2 + $0x90] sm:$0xff]  ;;  %v359_v59 = vld [vmem:[%s2822_s2 + $0x148] sm:$0xff]  ;;  %v1619_v60 = vpack.c.bf16 %v357_v51, %v353_v50 }
  0x3c   : > { %1528 = vmatprep.subr.bf16.mxu1 %v1527_v37  ;;  %v347_v37 = vld [vmem:[%s2822_s2 + $0xe8] sm:$0xff]  ;;  %v1549_v40 = vpack.c.bf16 %v338_v32, %v334_v31  ;;  %v1613_v41 = vpack.c.bf16 %v340_v35, %v336_v33  ;;  %v449_v62 = vld [vmem:[%s2098_s22 + $0x18] sm:$0xff]  ;;  %v448_v63 = vld [vmem:[%s2098_s22 + $0x10] sm:$0xff] }
  0x3d   : > { %v1551_v42 = vpack.c.bf16 %v347_v37, %v343_v36  ;;  %v361_v0 = vld [vmem:[%s2822_s2 + $0x158] sm:$0xff]  ;;  %v360_v7 = vld [vmem:[%s2822_s2 + $0x150] sm:$0xff]  ;;  %v451_v8 = vld [vmem:[%s2098_s22 + $0x28] sm:$0xff] }
  0x3e   : > { %1466 = vmatpush1.bf16.msra.mxu0 %v1465_v43  ;;  %v342_v43 = vld [vmem:[%s2822_s2 + $0xc0] sm:$0xff]  ;;  %v365_v1 = vld [vmem:[%s2822_s2 + $0x178] sm:$0xff]  ;;  %v364_v11 = vld [vmem:[%s2822_s2 + $0x170] sm:$0xff] }
  0x3f   : > { %1530 = vmatpush1.bf16.msra.mxu1 %v1529_v44  ;;  %1468 = vmatprep.subr.bf16.mxu0 %v1467_v45  ;;  %v346_v44 = vld [vmem:[%s2822_s2 + $0xe0] sm:$0xff]  ;;  %v344_v45 = vld [vmem:[%s2822_s2 + $0xd0] sm:$0xff]  ;;  %v1623_v10 = vpack.c.bf16 %v365_v1, %v361_v0  ;;  %v367_v12 = vld [vmem:[%s2822_s2 + $0x188] sm:$0xff]  ;;  %v1625_v19 = vpack.c.bf16 %v364_v11, %v360_v7 }
  0x40   : > { %1532 = vmatprep.subr.bf16.mxu1 %v1531_v49  ;;  %v355_v49 = vld [vmem:[%s2822_s2 + $0x128] sm:$0xff]  ;;  %v1553_v52 = vpack.c.bf16 %v346_v44, %v342_v43  ;;  %v369_v14 = vld [vmem:[%s2822_s2 + $0x198] sm:$0xff]  ;;  %v370_v21 = vld [vmem:[%s2822_s2 + $0x1a0] sm:$0xff] }
  0x41   : > { %v371_v13 = vld [vmem:[%s2822_s2 + $0x1a8] sm:$0xff]  ;;  %v452_v23 = vld [vmem:[%s2098_s22 + $0x30] sm:$0xff]  ;;  %v378_v35 = vld [vmem:[%s2822_s2 + $0x1e0] sm:$0xff] }
  0x42   : > { %1470 = vmatpush1.bf16.msra.mxu0 %v1469_v55  ;;  %v1617_v55 = vpack.c.bf16 %v348_v47, %v344_v45  ;;  %v1563_v20 = vpack.c.bf16 %v371_v13, %v367_v12  ;;  %v372_v25 = vld [vmem:[%s2822_s2 + $0x1b0] sm:$0xff]  ;;  %v375_v26 = vld [vmem:[%s2822_s2 + $0x1c8] sm:$0xff]  ;;  %v386_v47 = vld [vmem:[%s2822_s2 + $0x220] sm:$0xff] }
  0x43   : > { %1534 = vmatpush1.bf16.msra.mxu1 %v1533_v56  ;;  %1472 = vmatprep.subr.bf16.mxu0 %v1471_v57  ;;  %v1555_v56 = vpack.c.bf16 %v355_v49, %v351_v48  ;;  %v352_v57 = vld [vmem:[%s2822_s2 + $0x110] sm:$0xff]  ;;  %v379_v27 = vld [vmem:[%s2822_s2 + $0x1e8] sm:$0xff]  ;;  %v393_v53 = vld [vmem:[%s2822_s2 + $0x258] sm:$0xff] }
  0x44   : > { %1536 = vmatprep.subr.bf16.mxu1 %v1535_v61  ;;  %v363_v61 = vld [vmem:[%s2822_s2 + $0x168] sm:$0xff]  ;;  %v1567_v33 = vpack.c.bf16 %v379_v27, %v375_v26  ;;  %v376_v36 = vld [vmem:[%s2822_s2 + $0x1d0] sm:$0xff]  ;;  %v397_v54 = vld [vmem:[%s2822_s2 + $0x278] sm:$0xff] }
  0x45   : > { %v1559_v6 = vpack.c.bf16 %v363_v61, %v359_v59  ;;  %v311_v31 = vld [vmem:[%s2386_s16 + $0x8] sm:$0xff]  ;;  %v380_v38 = vld [vmem:[%s2822_s2 + $0x1f0] sm:$0xff]  ;;  %v394_v59 = vld [vmem:[%s2822_s2 + $0x260] sm:$0xff]  ;;  %v1639_v61 = vpack.c.bf16 %v397_v54, %v393_v53 }
  0x46   : > { %1474 = vmatpush1.bf16.msra.mxu0 %v1473_v3  ;;  %v358_v3 = vld [vmem:[%s2822_s2 + $0x140] sm:$0xff]  ;;  %v383_v39 = vld [vmem:[%s2822_s2 + $0x208] sm:$0xff]  ;;  %v1633_v44 = vpack.c.bf16 %v380_v38, %v376_v36  ;;  %v384_v48 = vld [vmem:[%s2822_s2 + $0x210] sm:$0xff] }
  0x47   : > { %1538 = vmatpush1.bf16.msra.mxu1 %v1537_v4  ;;  %1540 = vmatprep.subr.bf16.mxu0 %v1539_v5  ;;  %v362_v4 = vld [vmem:[%s2822_s2 + $0x160] sm:$0xff]  ;;  %v1621_v5 = vpack.c.bf16 %v356_v58, %v352_v57  ;;  %v388_v50 = vld [vmem:[%s2822_s2 + $0x230] sm:$0xff]  ;;  %v391_v51 = vld [vmem:[%s2822_s2 + $0x248] sm:$0xff] }
  0x48   : > { %1604 = vmatprep.subr.bf16.mxu1 %v1603_v9  ;;  %v450_v9 = vld [vmem:[%s2098_s22 + $0x20] sm:$0xff]  ;;  %v403_v0 = vld [vmem:[%s2822_s2 + $0x2a8] sm:$0xff]  ;;  %v401_v1 = vld [vmem:[%s2822_s2 + $0x298] sm:$0xff] }
  0x49   : > { %647 = vmatmul.mubr.f32.vlgmr.msra.gmra.mrb[0].mxu0 %v446_v15  ;;  %v390_v58 = vld [vmem:[%s2822_s2 + $0x240] sm:$0xff]  ;;  %v407_v11 = vld [vmem:[%s2822_s2 + $0x2c8] sm:$0xff]  ;;  %v409_v13 = vld [vmem:[%s2822_s2 + $0x2d8] sm:$0xff] }
  0x4a   : > { %736 = vmatmul.mubr.f32.vlgmr.msra.gmra.mrb[0].mxu1 %v446_v15  ;;  %1542 = vmatpush1.bf16.msra.mxu0 %v1541_v16  ;;  %v373_v15 = vld [vmem:[%s2822_s2 + $0x1b8] sm:$0xff]  ;;  %v1561_v16 = vpack.c.bf16 %v362_v4, %v358_v3  ;;  %v1577_v3 = vpack.c.bf16 %v394_v59, %v390_v58  ;;  %v402_v7 = vld [vmem:[%s2822_s2 + $0x2a0] sm:$0xff]  ;;  %v411_v12 = vld [vmem:[%s2822_s2 + $0x2e8] sm:$0xff] }
  0x4b   : > { %1606 = vmatpush1.bf16.msra.mxu1 %v1605_v17  ;;  %1544 = vmatprep.subr.bf16.mxu0 %v1543_v18  ;;  %v366_v17 = vld [vmem:[%s2822_s2 + $0x180] sm:$0xff]  ;;  %v453_v18 = vld [vmem:[%s2098_s22 + $0x38] sm:$0xff]  ;;  %v1627_v24 = vpack.c.bf16 %v373_v15, %v369_v14  ;;  %v427_v36 = vld [vmem:[%s2822_s2 + $0x368] sm:$0xff] }
  0x4c   : > { %1608 = vmatprep.subr.bf16.mxu1 %v1607_v22  ;;  %652 = vmatprep.mubr.f32.mxu0 %v449_v62  ;;  %v368_v22 = vld [vmem:[%s2822_s2 + $0x190] sm:$0xff]  ;;  %v413_v14 = vld [vmem:[%s2822_s2 + $0x2f8] sm:$0xff]  ;;  %v430_v54 = vld [vmem:[%s2822_s2 + $0x380] sm:$0xff] }
  0x4d   : > { %741 = vmatprep.mubr.f32.mxu1 %v449_v62  ;;  %653 = vmatmul.mubr.f32.gmra.mrb[2].mxu0 %v448_v63  ;;  %v1629_v32 = vpack.c.bf16 %v372_v25, %v368_v22  ;;  %v396_v62 = vld [vmem:[%s2822_s2 + $0x270] sm:$0xff]  ;;  %v417_v25 = vld [vmem:[%s2822_s2 + $0x318] sm:$0xff]  ;;  %v439_v59 = vld [vmem:[%s2822_s2 + $0x3c8] sm:$0xff] }
  0x4e   : > { %1546 = vmatpush1.bf16.msra.mxu0 %v1545_v28  ;;  %742 = vmatmul.mubr.f32.gmra.mrb[2].mxu1 %v448_v63  ;;  %v377_v28 = vld [vmem:[%s2822_s2 + $0x1d8] sm:$0xff]  ;;  %v399_v63 = vld [vmem:[%s2822_s2 + $0x288] sm:$0xff]  ;;  %v412_v22 = vld [vmem:[%s2822_s2 + $0x2f0] sm:$0xff] }
  0x4f   : > { %1610 = vmatpush1.bf16.msra.mxu1 %v1609_v29  ;;  %1548 = vmatprep.subr.bf16.mxu0 %v1547_v30  ;;  %v381_v29 = vld [vmem:[%s2822_s2 + $0x1f8] sm:$0xff]  ;;  %v1565_v30 = vpack.c.bf16 %v370_v21, %v366_v17  ;;  %v1583_v17 = vpack.c.bf16 %v411_v12, %v407_v11  ;;  %v1647_v21 = vpack.c.bf16 %v413_v14, %v409_v13  ;;  %v436_v58 = vld [vmem:[%s2822_s2 + $0x3b0] sm:$0xff] }
  0x50   : > { %1612 = vmatprep.subr.bf16.mxu1 %v1611_v34  ;;  %658 = vmatprep.mubr.f32.mxu0 %v451_v8  ;;  %v374_v34 = vld [vmem:[%s2822_s2 + $0x1c0] sm:$0xff]  ;;  %v1631_v37 = vpack.c.bf16 %v381_v29, %v377_v28  ;;  %v421_v26 = vld [vmem:[%s2822_s2 + $0x338] sm:$0xff] }
  0x51   : > { %747 = vmatprep.mubr.f32.mxu1 %v451_v8  ;;  %659 = vmatmul.mubr.f32.gmra.mrb[4].mxu0 %v450_v9  ;;  %v1569_v43 = vpack.c.bf16 %v378_v35, %v374_v34  ;;  %v400_v8 = vld [vmem:[%s2822_s2 + $0x290] sm:$0xff]  ;;  %v423_v35 = vld [vmem:[%s2822_s2 + $0x348] sm:$0xff]  ;;  %v429_v38 = vld [vmem:[%s2822_s2 + $0x378] sm:$0xff] }
  0x52   : > { %1550 = vmatpush1.bf16.msra.mxu0 %v1549_v40  ;;  %748 = vmatmul.mubr.f32.gmra.mrb[4].mxu1 %v450_v9  ;;  %v387_v40 = vld [vmem:[%s2822_s2 + $0x228] sm:$0xff]  ;;  %v420_v34 = vld [vmem:[%s2822_s2 + $0x330] sm:$0xff] }
  0x53   : > { %1614 = vmatpush1.bf16.msra.mxu1 %v1613_v41  ;;  %1552 = vmatprep.subr.bf16.mxu0 %v1551_v42  ;;  %v385_v41 = vld [vmem:[%s2822_s2 + $0x218] sm:$0xff]  ;;  %v1571_v45 = vpack.c.bf16 %v387_v40, %v383_v39 }
  0x54   : > { %1616 = vmatprep.subr.bf16.mxu1 %v1615_v46  ;;  %664 = vmatprep.mubr.f32.mxu0 %v453_v18  ;;  %v389_v42 = vld [vmem:[%s2822_s2 + $0x238] sm:$0xff]  ;;  %v382_v46 = vld [vmem:[%s2822_s2 + $0x200] sm:$0xff] }
  0x55   : > { %753 = vmatprep.mubr.f32.mxu1 %v453_v18  ;;  %665 = vmatmul.mubr.f32.gmra.mrb[6].mxu0 %v452_v23  ;;  %v1635_v49 = vpack.c.bf16 %v389_v42, %v385_v41  ;;  %v406_v18 = vld [vmem:[%s2822_s2 + $0x2c0] sm:$0xff]  ;;  %v1591_v41 = vpack.c.bf16 %v427_v36, %v423_v35  ;;  %v312_v35 = vld [vmem:[%s2386_s16 + $0x10] sm:$0xff] }
  0x56   : > { %1554 = vmatpush1.bf16.msra.mxu0 %v1553_v52  ;;  %754 = vmatmul.mubr.f32.gmra.mrb[6].mxu1 %v452_v23  ;;  %v395_v52 = vld [vmem:[%s2822_s2 + $0x268] sm:$0xff]  ;;  %v422_v42 = vld [vmem:[%s2822_s2 + $0x340] sm:$0xff] }
  0x57   : > { %1618 = vmatpush1.bf16.msra.mxu1 %v1617_v55  ;;  %1556 = vmatprep.subr.bf16.mxu0 %v1555_v56  ;;  %v1573_v55 = vpack.c.bf16 %v386_v47, %v382_v46  ;;  %v1637_v56 = vpack.c.bf16 %v388_v50, %v384_v48  ;;  %v1575_v57 = vpack.c.bf16 %v395_v52, %v391_v51  ;;  %v415_v23 = vld [vmem:[%s2822_s2 + $0x308] sm:$0xff]  ;;  %v428_v46 = vld [vmem:[%s2822_s2 + $0x370] sm:$0xff]  ;;  %v437_v50 = vld [vmem:[%s2822_s2 + $0x3b8] sm:$0xff] }
  0x58   : > { %1620 = vmatprep.subr.bf16.mxu1 %v1619_v60  ;;  %824 = vmatprep.mubr.f32.mxu0 %v311_v31  ;;  %v392_v60 = vld [vmem:[%s2822_s2 + $0x250] sm:$0xff]  ;;  %v431_v47 = vld [vmem:[%s2822_s2 + $0x388] sm:$0xff]  ;;  %v1044_v36 = vld [vmem:[%s2825_s5 + $0x1a0] sm:$0xff] }
  0x59   : > { %913 = vmatprep.mubr.f32.mxu1 %v311_v31  ;;  %v1641_v4 = vpack.c.bf16 %v396_v62, %v392_v60  ;;  %v418_v31 = vld [vmem:[%s2822_s2 + $0x320] sm:$0xff]  ;;  %v435_v48 = vld [vmem:[%s2822_s2 + $0x3a8] sm:$0xff]  ;;  %v445_v62 = vld [vmem:[%s2822_s2 + $0x3f8] sm:$0xff] }
  0x5a   : > { %1558 = vmatpush1.bf16.msra.mxu0 %v1557_v2  ;;  %v405_v2 = vld [vmem:[%s2822_s2 + $0x2b8] sm:$0xff]  ;;  %v1595_v53 = vpack.c.bf16 %v435_v48, %v431_v47  ;;  %v443_v60 = vld [vmem:[%s2822_s2 + $0x3e8] sm:$0xff]  ;;  %v1014_v47 = vld [vmem:[%s2825_s5 + $0xb0] sm:$0xff] }
  0x5b   : > { %1622 = vmatpush1.bf16.msra.mxu1 %v1621_v5  ;;  %1560 = vmatprep.subr.bf16.mxu0 %v1559_v6  ;;  %v1579_v5 = vpack.c.bf16 %v403_v0, %v399_v63  ;;  %v398_v6 = vld [vmem:[%s2822_s2 + $0x280] sm:$0xff]  ;;  %v1643_v9 = vpack.c.bf16 %v405_v2, %v401_v1  ;;  %v1599_v1 = vpack.c.bf16 %v443_v60, %v439_v59  ;;  %v1015_v48 = vld [vmem:[%s2825_s5 + $0xb8] sm:$0xff] }
  0x5c   : > { %1624 = vmatprep.subr.bf16.mxu1 %v1623_v10  ;;  %v404_v10 = vld [vmem:[%s2822_s2 + $0x2b0] sm:$0xff]  ;;  %v1581_v15 = vpack.c.bf16 %v402_v7, %v398_v6  ;;  %v438_v2 = vld [vmem:[%s2822_s2 + $0x3c0] sm:$0xff]  ;;  %v1031_v60 = vld [vmem:[%s2825_s5 + $0x138] sm:$0xff] }
  0x5d   : > { %v444_v6 = vld [vmem:[%s2822_s2 + $0x3f0] sm:$0xff]  ;;  %v1008_v7 = vld [vmem:[%s2825_s5 + $0x80] sm:$0xff] }
  0x5e   : > { %1562 = vmatpush1.bf16.msra.mxu0 %v1561_v16  ;;  %v1645_v16 = vpack.c.bf16 %v404_v10, %v400_v8  ;;  %v1009_v8 = vld [vmem:[%s2825_s5 + $0x88] sm:$0xff] }
  0x5f   : > { %1626 = vmatpush1.bf16.msra.mxu1 %v1625_v19  ;;  %1564 = vmatprep.subr.bf16.mxu0 %v1563_v20  ;;  %v410_v19 = vld [vmem:[%s2822_s2 + $0x2e0] sm:$0xff]  ;;  %v408_v20 = vld [vmem:[%s2822_s2 + $0x2d0] sm:$0xff]  ;;  %v1041_v10 = vld [vmem:[%s2825_s5 + $0x188] sm:$0xff]  ;;  %v1667_v13 = vpack.c.bf16 %v1009_v8, %v1008_v7 }
  0x60   : > { %1628 = vmatprep.subr.bf16.mxu1 %v1627_v24  ;;  %v419_v24 = vld [vmem:[%s2822_s2 + $0x328] sm:$0xff]  ;;  %v1585_v27 = vpack.c.bf16 %v410_v19, %v406_v18  ;;  %v1649_v28 = vpack.c.bf16 %v412_v22, %v408_v20  ;;  %v1010_v19 = vld [vmem:[%s2825_s5 + $0x90] sm:$0xff]  ;;  %v1011_v20 = vld [vmem:[%s2825_s5 + $0x98] sm:$0xff] }
  0x61   : > { %v1587_v29 = vpack.c.bf16 %v419_v24, %v415_v23  ;;  %v1025_v18 = vld [vmem:[%s2825_s5 + $0x108] sm:$0xff]  ;;  %v1042_v22 = vld [vmem:[%s2825_s5 + $0x190] sm:$0xff]  ;;  %v1043_v23 = vld [vmem:[%s2825_s5 + $0x198] sm:$0xff] }
  0x62   : > { %1566 = vmatpush1.bf16.msra.mxu0 %v1565_v30  ;;  %v414_v30 = vld [vmem:[%s2822_s2 + $0x300] sm:$0xff]  ;;  %v313_v24 = vld [vmem:[%s2386_s16 + $0x18] sm:$0xff] }
  0x63   : > { %1630 = vmatpush1.bf16.msra.mxu1 %v1629_v32  ;;  %1568 = vmatprep.subr.bf16.mxu0 %v1567_v33  ;;  %v416_v32 = vld [vmem:[%s2822_s2 + $0x310] sm:$0xff]  ;;  %v1651_v33 = vpack.c.bf16 %v421_v26, %v417_v25  ;;  %v1589_v39 = vpack.c.bf16 %v418_v31, %v414_v30  ;;  %v1703_v31 = vpack.c.bf16 %v1043_v23, %v1042_v22  ;;  %v1032_v7 = vld [vmem:[%s2825_s5 + $0x140] sm:$0xff]  ;;  %v1021_v23 = vld [vmem:[%s2825_s5 + $0xe8] sm:$0xff] }
  0x64   : > { %1632 = vmatprep.subr.bf16.mxu1 %v1631_v37  ;;  %v425_v37 = vld [vmem:[%s2822_s2 + $0x358] sm:$0xff]  ;;  %v1653_v40 = vpack.c.bf16 %v420_v34, %v416_v32  ;;  %v1026_v30 = vld [vmem:[%s2825_s5 + $0x110] sm:$0xff]  ;;  %v1013_v34 = vld [vmem:[%s2825_s5 + $0xa8] sm:$0xff] }
  0x65   : > { %v1027_v32 = vld [vmem:[%s2825_s5 + $0x118] sm:$0xff]  ;;  %v1020_v22 = vld [vmem:[%s2825_s5 + $0xe0] sm:$0xff] }
  0x66   : > { %1570 = vmatpush1.bf16.msra.mxu0 %v1569_v43  ;;  %v426_v43 = vld [vmem:[%s2822_s2 + $0x360] sm:$0xff] }
  0x67   : > { %1634 = vmatpush1.bf16.msra.mxu1 %v1633_v44  ;;  %1572 = vmatprep.subr.bf16.mxu0 %v1571_v45  ;;  %v424_v44 = vld [vmem:[%s2822_s2 + $0x350] sm:$0xff]  ;;  %v1655_v45 = vpack.c.bf16 %v429_v38, %v425_v37  ;;  %v1593_v51 = vpack.c.bf16 %v426_v43, %v422_v42  ;;  %v1045_v37 = vld [vmem:[%s2825_s5 + $0x1a8] sm:$0xff]  ;;  %v996_v42 = vld [vmem:[%s2825_s5 + $0x20] sm:$0xff] }
  0x68   : > { %1636 = vmatprep.subr.bf16.mxu1 %v1635_v49  ;;  %v433_v49 = vld [vmem:[%s2822_s2 + $0x398] sm:$0xff]  ;;  %v1657_v52 = vpack.c.bf16 %v428_v46, %v424_v44  ;;  %v315_v38 = vld [vmem:[%s2386_s16 + $0x28] sm:$0xff]  ;;  %v1028_v44 = vld [vmem:[%s2825_s5 + $0x120] sm:$0xff] }
  0x69   : > { %v997_v43 = vld [vmem:[%s2825_s5 + $0x28] sm:$0xff] }
  0x6a   : > { %1574 = vmatpush1.bf16.msra.mxu0 %v1573_v55  ;;  %v434_v55 = vld [vmem:[%s2822_s2 + $0x3a0] sm:$0xff]  ;;  %v1029_v46 = vld [vmem:[%s2825_s5 + $0x128] sm:$0xff] }
  0x6b   : > { %1638 = vmatpush1.bf16.msra.mxu1 %v1637_v56  ;;  %1576 = vmatprep.subr.bf16.mxu0 %v1575_v57  ;;  %v432_v56 = vld [vmem:[%s2822_s2 + $0x390] sm:$0xff]  ;;  %v1659_v57 = vpack.c.bf16 %v437_v50, %v433_v49  ;;  %v1597_v63 = vpack.c.bf16 %v434_v55, %v430_v54  ;;  %v314_v49 = vld [vmem:[%s2386_s16 + $0x20] sm:$0xff]  ;;  %v1709_v54 = vpack.c.bf16 %v1029_v46, %v1028_v44  ;;  %v1039_v46 = vld [vmem:[%s2825_s5 + $0x178] sm:$0xff] }
  0x6c   : > { %1640 = vmatprep.subr.bf16.mxu1 %v1639_v61  ;;  %v441_v61 = vld [vmem:[%s2822_s2 + $0x3d8] sm:$0xff]  ;;  %v1661_v0 = vpack.c.bf16 %v436_v58, %v432_v56  ;;  %v1046_v50 = vld [vmem:[%s2825_s5 + $0x1b0] sm:$0xff]  ;;  %v1679_v55 = vpack.c.bf16 %v1015_v48, %v1014_v47  ;;  %v940_v48 = vlaneseq }
  0x6d   : > { %v998_v56 = vld [vmem:[%s2825_s5 + $0x30] sm:$0xff] }
  0x6e   : > { %1578 = vmatpush1.bf16.msra.mxu0 %v1577_v3  ;;  %v442_v3 = vld [vmem:[%s2822_s2 + $0x3e0] sm:$0xff]  ;;  %v1030_v58 = vld [vmem:[%s2825_s5 + $0x130] sm:$0xff] }
  0x6f   : > { %1642 = vmatpush1.bf16.msra.mxu1 %v1641_v4  ;;  %1580 = vmatprep.subr.bf16.mxu0 %v1579_v5  ;;  %v440_v4 = vld [vmem:[%s2822_s2 + $0x3d0] sm:$0xff]  ;;  %v1663_v5 = vpack.c.bf16 %v445_v62, %v441_v61  ;;  %v1601_v11 = vpack.c.bf16 %v442_v3, %v438_v2  ;;  %v1016_v61 = vld [vmem:[%s2825_s5 + $0xc0] sm:$0xff]  ;;  %v1017_v62 = vld [vmem:[%s2825_s5 + $0xc8] sm:$0xff]  ;;  %v1713_v3 = vpack.c.bf16 %v1031_v60, %v1030_v58 }
  0x70   : > { %1644 = vmatprep.subr.bf16.mxu1 %v1643_v9  ;;  %v1040_v9 = vld [vmem:[%s2825_s5 + $0x180] sm:$0xff]  ;;  %v1665_v12 = vpack.c.bf16 %v444_v6, %v440_v4  ;;  %v1683_v4 = vpack.c.bf16 %v1017_v62, %v1016_v61  ;;  %v1001_v6 = vld [vmem:[%s2825_s5 + $0x48] sm:$0xff] }
  0x71   : > { %v1699_v14 = vpack.c.bf16 %v1041_v10, %v1040_v9  ;;  %v1033_v9 = vld [vmem:[%s2825_s5 + $0x148] sm:$0xff]  ;;  %v1018_v10 = vld [vmem:[%s2825_s5 + $0xd0] sm:$0xff] }
  0x72   : > { %1582 = vmatpush1.bf16.msra.mxu0 %v1581_v15  ;;  %v992_v15 = vld [vmem:[%s2825_s5] sm:$0xff] }
  0x73   : > { %1646 = vmatpush1.bf16.msra.mxu1 %v1645_v16  ;;  %1584 = vmatprep.subr.bf16.mxu0 %v1583_v17  ;;  %v993_v16 = vld [vmem:[%s2825_s5 + $0x8] sm:$0xff]  ;;  %v1024_v17 = vld [vmem:[%s2825_s5 + $0x100] sm:$0xff] }
  0x74   : > { %1648 = vmatprep.subr.bf16.mxu1 %v1647_v21  ;;  %v310_v21 = vld [vmem:[%s2386_s16] sm:$0xff]  ;;  %v1669_v25 = vpack.c.bf16 %v993_v16, %v992_v15  ;;  %v1701_v26 = vpack.c.bf16 %v1025_v18, %v1024_v17  ;;  %v1717_v15 = vpack.c.bf16 %v1033_v9, %v1032_v7  ;;  %v1002_v17 = vld [vmem:[%s2825_s5 + $0x50] sm:$0xff]  ;;  %v1003_v18 = vld [vmem:[%s2825_s5 + $0x58] sm:$0xff] }
  0x76   : > { %1586 = vmatpush1.bf16.msra.mxu0 %v1585_v27  ;;  %v1671_v27 = vpack.c.bf16 %v1011_v20, %v1010_v19  ;;  %v1034_v19 = vld [vmem:[%s2825_s5 + $0x150] sm:$0xff] }
  0x77   : > { %1650 = vmatpush1.bf16.msra.mxu1 %v1649_v28  ;;  %1588 = vmatprep.subr.bf16.mxu0 %v1587_v29  ;;  %v994_v28 = vld [vmem:[%s2825_s5 + $0x10] sm:$0xff]  ;;  %v995_v29 = vld [vmem:[%s2825_s5 + $0x18] sm:$0xff] }
  0x78   : > { %1652 = vmatprep.subr.bf16.mxu1 %v1651_v33  ;;  %v1012_v33 = vld [vmem:[%s2825_s5 + $0xa0] sm:$0xff] }
  0x7a   : > { %1590 = vmatpush1.bf16.msra.mxu0 %v1589_v39  ;;  %v1673_v39 = vpack.c.bf16 %v995_v29, %v994_v28  ;;  %v1691_v28 = vpack.c.bf16 %v1021_v23, %v1020_v22 }
  0x7b   : > { %1654 = vmatpush1.bf16.msra.mxu1 %v1653_v40  ;;  %1592 = vmatprep.subr.bf16.mxu0 %v1591_v41  ;;  %v1705_v40 = vpack.c.bf16 %v1027_v32, %v1026_v30  ;;  %v1675_v41 = vpack.c.bf16 %v1013_v34, %v1012_v33  ;;  %v1004_v30 = vld [vmem:[%s2825_s5 + $0x60] sm:$0xff]  ;;  %v1037_v34 = vld [vmem:[%s2825_s5 + $0x168] sm:$0xff] }
  0x7c   : > { %1656 = vmatprep.subr.bf16.mxu1 %v1655_v45  ;;  %v1707_v45 = vpack.c.bf16 %v1045_v37, %v1044_v36  ;;  %v1036_v32 = vld [vmem:[%s2825_s5 + $0x160] sm:$0xff]  ;;  %v1022_v36 = vld [vmem:[%s2825_s5 + $0xf0] sm:$0xff]  ;;  %v1023_v37 = vld [vmem:[%s2825_s5 + $0xf8] sm:$0xff] }
  0x7e   : > { %1594 = vmatpush1.bf16.msra.mxu0 %v1593_v51  ;;  %v1047_v51 = vld [vmem:[%s2825_s5 + $0x1b8] sm:$0xff] }
  0x7f   : > { %1658 = vmatpush1.bf16.msra.mxu1 %v1657_v52  ;;  %1596 = vmatprep.subr.bf16.mxu0 %v1595_v53  ;;  %v317_v52 = vld [vmem:[%s2386_s16 + $0x38] sm:$0xff]  ;;  %v1677_v53 = vpack.c.bf16 %v997_v43, %v996_v42  ;;  %v1711_v59 = vpack.c.bf16 %v1047_v51, %v1046_v50  ;;  %v938_v51 = vld [vmem:[%s2824_s4] sm:$0xf] }
  0x80   : > { %1660 = vmatprep.subr.bf16.mxu1 %v1659_v57  ;;  %v999_v57 = vld [vmem:[%s2825_s5 + $0x38] sm:$0xff] }
  0x81   : > { %v1681_v2 = vpack.c.bf16 %v999_v57, %v998_v56  ;;  %v1007_v42 = vld [vmem:[%s2825_s5 + $0x78] sm:$0xff] }
  0x82   : > { %1598 = vmatpush1.bf16.msra.mxu0 %v1597_v63  ;;  %v316_v63 = vld [vmem:[%s2386_s16 + $0x30] sm:$0xff] }
  0x83   : > { %1662 = vmatpush1.bf16.msra.mxu1 %v1661_v0  ;;  %1600 = vmatprep.subr.bf16.mxu0 %v1599_v1  ;;  %v1048_v0 = vld [vmem:[%s2825_s5 + $0x1c0] sm:$0xff]  ;;  %v1049_v1 = vld [vmem:[%s2825_s5 + $0x1c8] sm:$0xff] }
  0x84   : > { %1664 = vmatprep.subr.bf16.mxu1 %v1663_v5  ;;  %v1000_v5 = vld [vmem:[%s2825_s5 + $0x40] sm:$0xff]  ;;  %v1715_v8 = vpack.c.bf16 %v1049_v1, %v1048_v0 }
  0x86   : > { %1602 = vmatpush1.bf16.msra.mxu0 %v1601_v11  ;;  %v1019_v11 = vld [vmem:[%s2825_s5 + $0xd8] sm:$0xff] }
  0x87   : > { %1666 = vmatpush1.bf16.msra.mxu1 %v1665_v12  ;;  %1668 = vmatprep.subr.bf16.mxu0 %v1667_v13  ;;  %v1050_v12 = vld [vmem:[%s2825_s5 + $0x1d0] sm:$0xff]  ;;  %v1051_v13 = vld [vmem:[%s2825_s5 + $0x1d8] sm:$0xff]  ;;  %v1687_v16 = vpack.c.bf16 %v1019_v11, %v1018_v10 }
  0x88   : > { %1700 = vmatprep.subr.bf16.mxu1 %v1699_v14  ;;  %v1685_v14 = vpack.c.bf16 %v1001_v6, %v1000_v5  ;;  %v1719_v20 = vpack.c.bf16 %v1051_v13, %v1050_v12 }
  0x89   : > { %825 = vmatmul.mubr.f32.vlgmr.msra.gmra.mrb[0].mxu0 %v310_v21 }
  0x8a   : > { %914 = vmatmul.mubr.f32.vlgmr.msra.gmra.mrb[0].mxu1 %v310_v21  ;;  %830 = vmatprep.mubr.f32.mxu0 %v313_v24  ;;  %v1035_v21 = vld [vmem:[%s2825_s5 + $0x158] sm:$0xff] }
  0x8b   : > { %919 = vmatprep.mubr.f32.mxu1 %v313_v24  ;;  %1670 = vmatpush3.bf16.msra.mxu0 %v1669_v25  ;;  %v1052_v24 = vld [vmem:[%s2825_s5 + $0x1e0] sm:$0xff]  ;;  %v1053_v25 = vld [vmem:[%s2825_s5 + $0x1e8] sm:$0xff] }
  0x8c   : > { %1702 = vmatpush3.bf16.msra.mxu1 %v1701_v26  ;;  %1672 = vmatprep.subr.bf16.mxu0 %v1671_v27  ;;  %v1689_v26 = vpack.c.bf16 %v1003_v18, %v1002_v17  ;;  %v1721_v27 = vpack.c.bf16 %v1035_v21, %v1034_v19  ;;  %v1723_v29 = vpack.c.bf16 %v1053_v25, %v1052_v24 }
  0x8d   : > { %831 = vmatmul.mubr.f32.gmra.mrb[2].mxu0 %v312_v35  ;;  %1704 = vmatprep.subr.bf16.mxu1 %v1703_v31  ;;  %v1005_v31 = vld [vmem:[%s2825_s5 + $0x68] sm:$0xff] }
  0x8e   : > { %920 = vmatmul.mubr.f32.gmra.mrb[2].mxu1 %v312_v35  ;;  %836 = vmatprep.mubr.f32.mxu0 %v315_v38  ;;  %v1693_v33 = vpack.c.bf16 %v1005_v31, %v1004_v30  ;;  %v1725_v35 = vpack.c.bf16 %v1037_v34, %v1036_v32 }
  0x8f   : > { %925 = vmatprep.mubr.f32.mxu1 %v315_v38  ;;  %1674 = vmatpush3.bf16.msra.mxu0 %v1673_v39  ;;  %v1054_v38 = vld [vmem:[%s2825_s5 + $0x1f0] sm:$0xff]  ;;  %v1695_v39 = vpack.c.bf16 %v1023_v37, %v1022_v36 }
  0x90   : > { %1706 = vmatpush3.bf16.msra.mxu1 %v1705_v40  ;;  %1676 = vmatprep.subr.bf16.mxu0 %v1675_v41  ;;  %v1055_v40 = vld [vmem:[%s2825_s5 + $0x1f8] sm:$0xff]  ;;  %v1006_v41 = vld [vmem:[%s2825_s5 + $0x70] sm:$0xff] }
  0x91   : > { %837 = vmatmul.mubr.f32.gmra.mrb[4].mxu0 %v314_v49  ;;  %1708 = vmatprep.subr.bf16.mxu1 %v1707_v45  ;;  %v1727_v43 = vpack.c.bf16 %v1055_v40, %v1054_v38  ;;  %v1697_v44 = vpack.c.bf16 %v1007_v42, %v1006_v41  ;;  %v1038_v45 = vld [vmem:[%s2825_s5 + $0x170] sm:$0xff] }
  0x92   : > { %926 = vmatmul.mubr.f32.gmra.mrb[4].mxu1 %v314_v49  ;;  %842 = vmatprep.mubr.f32.mxu0 %v317_v52  ;;  %v1729_v47 = vpack.c.bf16 %v1039_v46, %v1038_v45  ;;  %v941_v49 = vshrl.u32 %v940_v48, 7  ;;  %v1318_v45 = vld [vmem:[%s2826_s6] ss:$0 sm:$0xff] }
  0x93   : > { %931 = vmatprep.mubr.f32.mxu1 %v317_v52  ;;  %1678 = vmatpush3.bf16.msra.mxu0 %v1677_v53 }
  0x94   : > { %1710 = vmatpush3.bf16.msra.mxu1 %v1709_v54  ;;  %1680 = vmatprep.subr.bf16.mxu0 %v1679_v55  ;;  %v942_v50 = vsub.s32 0, %v941_v49  ;;  %v950_v52 = vsub.s32 2, %v941_v49  ;;  %v946_v53 = vsub.s32 1, %v941_v49  ;;  %v954_v54 = vsub.s32 3, %v941_v49 }
  0x95   : > { %843 = vmatmul.mubr.f32.gmra.mrb[6].mxu0 %v316_v63  ;;  %1712 = vmatprep.subr.bf16.mxu1 %v1711_v59 }
  0x96   : > { %932 = vmatmul.mubr.f32.gmra.mrb[6].mxu1 %v316_v63  ;;  %v943_v55 = vrot.slane %v938_v51, %v942_v50  ;;  %v951_v56 = vrot.slane %v938_v51, %v950_v52  ;;  %v947_v57 = vrot.slane %v938_v51, %v946_v53  ;;  %v955_v58 = vrot.slane %v938_v51, %v954_v54 }
  0x97   : > { %1682 = vmatpush3.bf16.msra.mxu0 %v1681_v2 }
  0x98   : > { %1714 = vmatpush3.bf16.msra.mxu1 %v1713_v3  ;;  %1684 = vmatprep.subr.bf16.mxu0 %v1683_v4 }
  0x99   : > { %1716 = vmatprep.subr.bf16.mxu1 %v1715_v8 }
  0x9b   : > { %1686 = vmatpush3.bf16.msra.mxu0 %v1685_v14 }
  0x9c   : > { %1718 = vmatpush3.bf16.msra.mxu1 %v1717_v15  ;;  %1688 = vmatprep.subr.bf16.mxu0 %v1687_v16 }
  0x9d   : > { %1720 = vmatprep.subr.bf16.mxu1 %v1719_v20 }
  0x9f   : > { %1690 = vmatpush3.bf16.msra.mxu0 %v1689_v26 }
  0xa0   : > { %1722 = vmatpush3.bf16.msra.mxu1 %v1721_v27  ;;  %1692 = vmatprep.subr.bf16.mxu0 %v1691_v28 }
  0xa1   : > { %1724 = vmatprep.subr.bf16.mxu1 %v1723_v29 }
  0xa3   : > { %1694 = vmatpush3.bf16.msra.mxu0 %v1693_v33 }
  0xa4   : > { %1726 = vmatpush3.bf16.msra.mxu1 %v1725_v35  ;;  %1696 = vmatprep.subr.bf16.mxu0 %v1695_v39 }
  0xa5   : > { %1728 = vmatprep.subr.bf16.mxu1 %v1727_v43 }
  0xa7   : > { %1698 = vmatpush3.bf16.msra.mxu0 %v1697_v44 }
  0xa8   : > { %1730 = vmatpush3.bf16.msra.mxu1 %v1729_v47 }
 0x15c   : > { %v826_v59 = vpop.f32.mrb[0].mxu0 }
 0x15d   : > { %v960_v60 = vadd.f32 %v943_v55, %v826_v59  ;;  %v915_v61 = vpop.f32.mrb[0].mxu1  ;;  %v828_v62 = vpop.f32.mrb[1].mxu0 }
 0x15e   : > { %v962_v63 = vadd.f32 %v951_v56, %v915_v61  ;;  %v961_v0 = vadd.f32 %v947_v57, %v828_v62  ;;  %v917_v1 = vpop.f32.mrb[1].mxu1 }
 0x15f   : > { %v963_v2 = vadd.f32 %v955_v58, %v917_v1  ;;  %v976_v5 = vmax.f32 %v960_v60, 0.0 }
 0x160   : > { %v977_v3 = vmax.f32 %v961_v0, 0.0  ;;  %v832_v4 = vpop.f32.mrb[2].mxu0  ;;  %v978_v10 = vmax.f32 %v962_v63, 0.0 }
 0x161   : > { %v979_v6 = vmax.f32 %v963_v2, 0.0  ;;  %v964_v7 = vadd.f32 %v943_v55, %v832_v4  ;;  %v921_v8 = vpop.f32.mrb[2].mxu1  ;;  %v834_v9 = vpop.f32.mrb[3].mxu0 }
 0x162   : > { %v966_v11 = vadd.f32 %v951_v56, %v921_v8  ;;  %v965_v12 = vadd.f32 %v947_v57, %v834_v9  ;;  %v923_v13 = vpop.f32.mrb[3].mxu1  ;;  %1127 = vmatprep.mubr.f32.mxu0 %v977_v3 }
 0x163   : > { %v967_v14 = vadd.f32 %v955_v58, %v923_v13  ;;  %1212 = vmatprep.mubr.f32.mxu1 %v979_v6  ;;  %1128 = vmatmul.mubr.f32.vlgmr.msra.gmra.mrb[8].mxu0 %v976_v5  ;;  %v980_v17 = vmax.f32 %v964_v7, 0.0 }
 0x164   : > { %v981_v15 = vmax.f32 %v965_v12, 0.0  ;;  %1213 = vmatmul.mubr.f32.vlgmr.msra.gmra.mrb[8].mxu1 %v978_v10  ;;  %v838_v16 = vpop.f32.mrb[4].mxu0  ;;  %v982_v22 = vmax.f32 %v966_v11, 0.0 }
 0x165   : > { %v983_v18 = vmax.f32 %v967_v14, 0.0  ;;  %v968_v19 = vadd.f32 %v943_v55, %v838_v16  ;;  %v927_v20 = vpop.f32.mrb[4].mxu1  ;;  %v840_v21 = vpop.f32.mrb[5].mxu0 }
 0x166   : > { %v970_v23 = vadd.f32 %v951_v56, %v927_v20  ;;  %v969_v24 = vadd.f32 %v947_v57, %v840_v21  ;;  %v929_v25 = vpop.f32.mrb[5].mxu1  ;;  %1132 = vmatprep.mubr.f32.mxu0 %v981_v15 }
 0x167   : > { %v971_v26 = vadd.f32 %v955_v58, %v929_v25  ;;  %1217 = vmatprep.mubr.f32.mxu1 %v983_v18  ;;  %1133 = vmatmul.mubr.f32.gmra.mrb[10].mxu0 %v980_v17  ;;  %v984_v29 = vmax.f32 %v968_v19, 0.0 }
 0x168   : > { %v985_v27 = vmax.f32 %v969_v24, 0.0  ;;  %1218 = vmatmul.mubr.f32.gmra.mrb[10].mxu1 %v982_v22  ;;  %v844_v28 = vpop.f32.mrb[6].mxu0  ;;  %v986_v34 = vmax.f32 %v970_v23, 0.0 }
 0x169   : > { %v987_v30 = vmax.f32 %v971_v26, 0.0  ;;  %v972_v31 = vadd.f32 %v943_v55, %v844_v28  ;;  %v933_v32 = vpop.f32.mrb[6].mxu1  ;;  %v846_v33 = vpop.f32.mrb[7].mxu0 }
 0x16a   : > { %v974_v35 = vadd.f32 %v951_v56, %v933_v32  ;;  %v973_v36 = vadd.f32 %v947_v57, %v846_v33  ;;  %v935_v37 = vpop.f32.mrb[7].mxu1  ;;  %1137 = vmatprep.mubr.f32.mxu0 %v985_v27 }
 0x16b   : > { %v975_v38 = vadd.f32 %v955_v58, %v935_v37  ;;  %1222 = vmatprep.mubr.f32.mxu1 %v987_v30  ;;  %1138 = vmatmul.mubr.f32.gmra.mrb[12].mxu0 %v984_v29  ;;  %v988_v40 = vmax.f32 %v972_v31, 0.0 }
 0x16c   : > { %v989_v39 = vmax.f32 %v973_v36, 0.0  ;;  %1223 = vmatmul.mubr.f32.gmra.mrb[12].mxu1 %v986_v34  ;;  %v990_v42 = vmax.f32 %v974_v35, 0.0 }
 0x16d   : > { %v991_v41 = vmax.f32 %v975_v38, 0.0 }
 0x16e   : > { %1142 = vmatprep.mubr.f32.mxu0 %v989_v39 }
 0x16f   : > { %1227 = vmatprep.mubr.f32.mxu1 %v991_v41  ;;  %1143 = vmatmul.mubr.f32.gmra.mrb[14].mxu0 %v988_v40 }
 0x170   : > { %1228 = vmatmul.mubr.f32.gmra.mrb[14].mxu1 %v990_v42 }
 0x236   : > { %v1355_v43 = vpop.f32.mrb[8].mxu0 }
 0x237   : > { %v1399_v44 = vpop.f32.mrb[8].mxu1  ;;  %v1356_v46 = vpop.f32.mrb[9].mxu0 }
 0x238   : > { %v1357_v47 = vadd.f32 %v1356_v46, %v1355_v43  ;;  %v1400_v48 = vpop.f32.mrb[9].mxu1 }
 0x239   : > { %v1401_v49 = vadd.f32 %v1400_v48, %v1399_v44 }
 0x23a   : > { %v1130_v50 = vadd.f32 %v1357_v47, %v1318_v45  ;;  %v1358_v51 = vpop.f32.mrb[10].mxu0 }
 0x23b   : > { %v1402_v52 = vpop.f32.mrb[10].mxu1  ;;  %v1359_v53 = vpop.f32.mrb[11].mxu0 }
 0x23c   : > { %v1215_v54 = vadd.f32 %v1401_v49, %v1130_v50  ;;  %v1360_v55 = vadd.f32 %v1359_v53, %v1358_v51  ;;  %v1403_v56 = vpop.f32.mrb[11].mxu1 }
 0x23d   : > { %v1404_v57 = vadd.f32 %v1403_v56, %v1402_v52 }
 0x23e   : > { %1233 = vst [vmem:[%s308_s14] sm:$0xff] %v1215_v54  ;;  %v1135_v58 = vadd.f32 %v1360_v55, %v1318_v45  ;;  %v1361_v59 = vpop.f32.mrb[12].mxu0 }
 0x23f   : > { %v1405_v60 = vpop.f32.mrb[12].mxu1  ;;  %v1362_v61 = vpop.f32.mrb[13].mxu0 }
 0x240   : > { %v1220_v62 = vadd.f32 %v1404_v57, %v1135_v58  ;;  %v1363_v63 = vadd.f32 %v1362_v61, %v1361_v59  ;;  %v1406_v0 = vpop.f32.mrb[13].mxu1 }
 0x241   : > { %v1407_v1 = vadd.f32 %v1406_v0, %v1405_v60 }
 0x242   : > { %1234 = vst [vmem:[%s308_s14 + $0x8] sm:$0xff] %v1220_v62  ;;  %v1140_v2 = vadd.f32 %v1363_v63, %v1318_v45  ;;  %v1364_v3 = vpop.f32.mrb[14].mxu0 }
 0x243   : > { %v1408_v4 = vpop.f32.mrb[14].mxu1  ;;  %v1365_v5 = vpop.f32.mrb[15].mxu0 }
 0x244   : > { %v1225_v6 = vadd.f32 %v1407_v1, %v1140_v2  ;;  %v1366_v7 = vadd.f32 %v1365_v5, %v1364_v3  ;;  %v1409_v8 = vpop.f32.mrb[15].mxu1 }
 0x245   : > { %v1410_v9 = vadd.f32 %v1409_v8, %v1408_v4 }
 0x246   : > { %1235 = vst [vmem:[%s308_s14 + $0x10] sm:$0xff] %v1225_v6  ;;  %v1145_v10 = vadd.f32 %v1366_v7, %v1318_v45 }
 0x248   : > { %v1230_v11 = vadd.f32 %v1410_v9, %v1145_v10 }
 0x24a   : > { %1236 = vst [vmem:[%s308_s14 + $0x18] sm:$0xff] %v1230_v11 }
 0x24b PF: > { %s17_s24 = sadd.s32 1, %s1761_s24  }
 0x24c   : > { %p14_p4 = scmp.ge.s32.totalorder %s17_s24, 4  }
 0x24e   :  { %16 = sbr.rel (!%p14_p4) target bundleno = 1 (0x1), region = 81 }

</bundles_post_ra>
